<compile_context>
chip_gen: v7x
topology: tpu7x:2x2x1
jax: 0.10.0
libtpu: 0.0.40
codegen_flags: <defaults>
</compile_context>

<pallas_src>
import functools

import jax
import jax.numpy as jnp
from jax.experimental import pallas as pl
from jax.experimental.pallas import tpu as pltpu

LANE = 128
SUBLANE = 8


def _round_up(n, m):
    return ((n + m - 1) // m) * m


def dqn_kernel(out_actions, x_ref, w1_ref, b1_ref, w2_ref, b2_ref, q_ref, a_ref):
    # fc1: [tb, in] @ [in, h_p] -> f32 accumulation on the MXU.
    h = jnp.dot(x_ref[...], w1_ref[...], preferred_element_type=jnp.float32)
    # Bias + ReLU in f32 on the VPU (lane-dense: h_p is a multiple of 128).
    h = jnp.maximum(h + b1_ref[...], 0.0)
    # out: [tb, h_p] @ [h_p, out_p] -> f32 accumulation (lane-dense matmul).
    y = jnp.dot(h.astype(w2_ref.dtype), w2_ref[...],
                preferred_element_type=jnp.float32)
    q_full = y + b2_ref[...]                      # padded action cols are exactly 0

    # Compact Q writeback: only the real actions ([tb, out_actions]).
    q_ref[...] = q_full[:, :out_actions].astype(q_ref.dtype)

    # Fused greedy action (argmax over actions).  Cross-lane reductions run on
    # the XLU, which is idle in this kernel, so this is effectively free and
    # saves a second launch + Q re-read.
    col = jax.lax.broadcasted_iota(jnp.int32, q_full.shape, dimension=1)
    valid = col < out_actions
    q_m = jnp.where(valid, q_full, -jnp.inf)
    q_max = jnp.max(q_m, axis=-1, keepdims=True)
    idx = jnp.where(q_m == q_max, col, jnp.int32(jnp.iinfo(jnp.int32).max))
    a_ref[...] = jnp.min(idx, axis=-1, keepdims=True)


def prepare_dqn_params(w1, b1, w2, b2, mxu_dtype=jnp.float32):
    """One-time parameter prep (call once, reuse across forward calls).

    Pads hidden/output feature dims to lane multiples and casts weights to the
    MXU dtype (use jnp.bfloat16 on v6e/v7x for native MXU rate).  Zero padding
    is mathematically inert: padded W1 columns / b1 entries are zero,
    ReLU(0) = 0, and the matching padded W2 rows / b2 entries are zero.
    Biases stay f32 (VPU math is f32-safe on v5e)."""
    in_states, h1 = w1.shape
    out_actions = w2.shape[1]
    h_p = _round_up(h1, LANE)
    out_p = _round_up(out_actions, LANE)
    f32 = jnp.float32
    w1_p = jnp.zeros((in_states, h_p), mxu_dtype).at[:, :h1].set(w1.astype(mxu_dtype))
    b1_p = jnp.zeros((1, h_p), f32).at[:, :h1].set(jnp.asarray(b1, f32).reshape(1, h1))
    w2_p = jnp.zeros((h_p, out_p), mxu_dtype).at[:h1, :out_actions].set(
        w2.astype(mxu_dtype))
    b2_p = jnp.zeros((1, out_p), f32).at[:, :out_actions].set(
        jnp.asarray(b2, f32).reshape(1, out_actions))
    return w1_p, b1_p, w2_p, b2_p


def _batch_tiling(B):
    """Single tile (no padding at all) for small B; for large B an even number
    of ~256-512-row tiles so v7x's two TensorCores stay balanced with minimal
    tail padding."""
    if B <= 512:
        return B, 1                          # tb == full batch dim -> always legal
    num_tiles = 2 * pl.cdiv(B, 1024)         # even count; tiles land in ~256..512
    tb = _round_up(pl.cdiv(B, num_tiles), SUBLANE)
    return tb, num_tiles


@functools.partial(jax.jit, static_argnames=("out_actions",))
def dqn_forward(x, w1_p, b1_p, w2_p, b2_p, *, out_actions):
    """x: [B, in_states]; padded params from prepare_dqn_params.
    Returns (q: [B, out_actions] f32, greedy_action: [B, 1] int32)."""
    B, in_states = x.shape
    h_p = w1_p.shape[1]
    out_p = w2_p.shape[1]

    tb, num_tiles = _batch_tiling(B)
    b_p = tb * num_tiles

    x = x.astype(w1_p.dtype)                 # halves streamed bytes on bf16 path
    if b_p != B:                             # only the large-B tail needs padding
        x = jnp.zeros((b_p, in_states), x.dtype).at[:B].set(x)

    q, act = pl.pallas_call(
        functools.partial(dqn_kernel, out_actions),
        out_shape=(jax.ShapeDtypeStruct((b_p, out_actions), jnp.float32),
                   jax.ShapeDtypeStruct((b_p, 1), jnp.int32)),
        grid=(num_tiles,),
        in_specs=[
            # x: streamed per batch tile, unpadded lane dim (== full array dim).
            pl.BlockSpec((tb, in_states), lambda i: (i, 0)),
            # Weights / biases: constant index_map -> VMEM-resident across tiles.
            pl.BlockSpec((in_states, h_p), lambda i: (0, 0)),
            pl.BlockSpec((1, h_p), lambda i: (0, 0)),
            pl.BlockSpec((h_p, out_p), lambda i: (0, 0)),
            pl.BlockSpec((1, out_p), lambda i: (0, 0)),
        ],
        out_specs=(
            pl.BlockSpec((tb, out_actions), lambda i: (i, 0)),   # compact Q
            pl.BlockSpec((tb, 1), lambda i: (i, 0)),             # greedy action
        ),
        compiler_params=pltpu.CompilerParams(
            dimension_semantics=("parallel",)),
    )(x, w1_p, b1_p, w2_p, b2_p)

    if b_p != B:
        q, act = q[:B], act[:B]
    return q, act


def init_dqn_params(key, in_states, h1_nodes, out_actions):
    """Mimics PyTorch nn.Linear default init U[-1/sqrt(fan_in), 1/sqrt(fan_in)].
    Weights stored transposed: [in_features, out_features]."""
    k1, k2, k3, k4 = jax.random.split(key, 4)
    lim1 = 1.0 / jnp.sqrt(jnp.float32(in_states))
    lim2 = 1.0 / jnp.sqrt(jnp.float32(h1_nodes))
    w1 = jax.random.uniform(k1, (in_states, h1_nodes), jnp.float32, -lim1, lim1)
    b1 = jax.random.uniform(k2, (1, h1_nodes), jnp.float32, -lim1, lim1)
    w2 = jax.random.uniform(k3, (h1_nodes, out_actions), jnp.float32, -lim2, lim2)
    b2 = jax.random.uniform(k4, (1, out_actions), jnp.float32, -lim2, lim2)
    return w1, b1, w2, b2


if __name__ == "__main__":
    # Shapes consistent with a Blackjack DQN: state vector -> hidden -> Q-values.
    batch, in_states, h1_nodes, out_actions = 2, 8, 32, 2

    key = jax.random.PRNGKey(0)
    kx, kp = jax.random.split(key)
    x = jax.random.normal(kx, (batch, in_states), jnp.float32)
    w1, b1, w2, b2 = init_dqn_params(kp, in_states, h1_nodes, out_actions)

    # One-time parameter prep (padding hoisted out of the forward path).
    params = jax.block_until_ready(prepare_dqn_params(w1, b1, w2, b2))

    def ref_fwd(xx):
        return jnp.maximum(xx @ w1 + b1, 0.0) @ w2 + b2

    # Small batch: single tile, no padding anywhere.
    q, act = jax.block_until_ready(dqn_forward(x, *params, out_actions=out_actions))
    ref = ref_fwd(x)
    assert q.shape == (batch, out_actions) and act.shape == (batch, 1)
    assert jnp.allclose(q, ref, atol=1e-5, rtol=1e-5)
    assert jnp.array_equal(act[:, 0], jnp.argmax(q, axis=-1).astype(jnp.int32))

    # Larger single-tile batch (still no padding: tb == B).
    xb = jax.random.normal(kx, (300, in_states), jnp.float32)
    qb, actb = jax.block_until_ready(dqn_forward(xb, *params, out_actions=out_actions))
    refb = ref_fwd(xb)
    assert qb.shape == (300, out_actions)
    assert jnp.allclose(qb, refb, atol=1e-4, rtol=1e-4)
    assert jnp.array_equal(actb[:, 0], jnp.argmax(qb, axis=-1).astype(jnp.int32))

    # Multi-tile batch: exercises the even-tile-count, batch-padded path.
    xc = jax.random.normal(kx, (1100, in_states), jnp.float32)
    qc, actc = jax.block_until_ready(dqn_forward(xc, *params, out_actions=out_actions))
    refc = ref_fwd(xc)
    assert qc.shape == (1100, out_actions) and actc.shape == (1100, 1)
    assert jnp.allclose(qc, refc, atol=1e-4, rtol=1e-4)
    assert jnp.array_equal(actc[:, 0], jnp.argmax(qc, axis=-1).astype(jnp.int32))

    # bf16-MXU path (v6e/v7x feedback): weights/x in bf16, f32 accumulation.
    params_bf16 = jax.block_until_ready(
        prepare_dqn_params(w1, b1, w2, b2, mxu_dtype=jnp.bfloat16))
    q16, _ = jax.block_until_ready(
        dqn_forward(x, *params_bf16, out_actions=out_actions))
    assert jnp.allclose(q16, ref, atol=1e-1, rtol=1e-1)

    print("KERNEL_OK")
</pallas_src>

<mosaic_0001>
module attributes {stable_mosaic.version = 11 : i64} {
  func.func @dqn_kernel(%arg0: i32, %arg1: memref<2x8xf32, #tpu.memory_space<vmem>>, %arg2: memref<8x128xf32, #tpu.memory_space<vmem>>, %arg3: memref<1x128xf32, #tpu.memory_space<vmem>>, %arg4: memref<128x128xf32, #tpu.memory_space<vmem>>, %arg5: memref<1x128xf32, #tpu.memory_space<vmem>>, %arg6: memref<2x2xf32, #tpu.memory_space<vmem>>, %arg7: memref<2x1xi32, #tpu.memory_space<vmem>>) attributes {dimension_semantics = [#tpu.dimension_semantics<parallel>], iteration_bounds = array<i64: 1>, scalar_prefetch = 0 : i64, scratch_operands = 0 : i64, tpu.core_type = #tpu.core_type<tc>, window_params = [{transform_indices = @transform_0, window_bounds = array<i64: 2, 8>}, {pipeline_mode = #tpu.pipeline_mode<synchronous>, transform_indices = @transform_1, window_bounds = array<i64: 8, 128>}, {pipeline_mode = #tpu.pipeline_mode<synchronous>, transform_indices = @transform_2, window_bounds = array<i64: 1, 128>}, {pipeline_mode = #tpu.pipeline_mode<synchronous>, transform_indices = @transform_3, window_bounds = array<i64: 128, 128>}, {pipeline_mode = #tpu.pipeline_mode<synchronous>, transform_indices = @transform_4, window_bounds = array<i64: 1, 128>}, {transform_indices = @transform_5, window_bounds = array<i64: 2, 2>}, {transform_indices = @transform_6, window_bounds = array<i64: 2, 1>}]} {
    %c0 = arith.constant 0 : index
    %c0_0 = arith.constant 0 : index
    %0 = vector.load %arg1[%c0, %c0_0] : memref<2x8xf32, #tpu.memory_space<vmem>>, vector<2x8xf32>
    %c0_1 = arith.constant 0 : index
    %c0_2 = arith.constant 0 : index
    %1 = vector.load %arg2[%c0_1, %c0_2] : memref<8x128xf32, #tpu.memory_space<vmem>>, vector<8x128xf32>
    %cst = arith.constant dense<0.000000e+00> : vector<2x128xf32>
    %2 = tpu.matmul %0, %1, %cst {dimension_numbers = #tpu.dot_dimension_numbers<[1], [0], [0], [1], [0, 0, 1, 1], [], []>} : vector<2x8xf32>, vector<8x128xf32>, vector<2x128xf32> -> vector<2x128xf32>
    %c0_3 = arith.constant 0 : index
    %c0_4 = arith.constant 0 : index
    %3 = vector.load %arg3[%c0_3, %c0_4] : memref<1x128xf32, #tpu.memory_space<vmem>>, vector<1x128xf32>
    %4 = vector.broadcast %3 : vector<1x128xf32> to vector<2x128xf32>
    %5 = arith.addf %2, %4 : vector<2x128xf32>
    %cst_5 = arith.constant 0.000000e+00 : f32
    %6 = vector.broadcast %cst_5 : f32 to vector<2x128xf32>
    %7 = arith.maximumf %5, %6 : vector<2x128xf32>
    %c0_6 = arith.constant 0 : index
    %c0_7 = arith.constant 0 : index
    %8 = vector.load %arg4[%c0_6, %c0_7] : memref<128x128xf32, #tpu.memory_space<vmem>>, vector<128x128xf32>
    %cst_8 = arith.constant dense<0.000000e+00> : vector<2x128xf32>
    %9 = tpu.matmul %7, %8, %cst_8 {dimension_numbers = #tpu.dot_dimension_numbers<[1], [0], [0], [1], [0, 0, 1, 1], [], []>} : vector<2x128xf32>, vector<128x128xf32>, vector<2x128xf32> -> vector<2x128xf32>
    %c0_9 = arith.constant 0 : index
    %c0_10 = arith.constant 0 : index
    %10 = vector.load %arg5[%c0_9, %c0_10] : memref<1x128xf32, #tpu.memory_space<vmem>>, vector<1x128xf32>
    %11 = vector.broadcast %10 : vector<1x128xf32> to vector<2x128xf32>
    %12 = arith.addf %9, %11 : vector<2x128xf32>
    %13 = vector.extract_strided_slice %12 {offsets = [0, 0], sizes = [2, 2], strides = [1, 1]} : vector<2x128xf32> to vector<2x2xf32>
    %c0_11 = arith.constant 0 : index
    %c0_12 = arith.constant 0 : index
    %14 = vector.load %arg6[%c0_11, %c0_12] : memref<2x2xf32, #tpu.memory_space<vmem>>, vector<2x2xf32>
    tpu.vector_store %arg6[%c0_11, %c0_12], %13 {strides = array<i32>} : memref<2x2xf32, #tpu.memory_space<vmem>>, vector<2x2xf32>,
    %15 = tpu.iota {dimensions = array<i32: 1>} : vector<2x128xi32>
    %c2_i32 = arith.constant 2 : i32
    %16 = vector.broadcast %c2_i32 : i32 to vector<2x128xi32>
    %17 = arith.cmpi slt, %15, %16 : vector<2x128xi32>
    %cst_13 = arith.constant 0xFF800000 : f32
    %18 = vector.broadcast %cst_13 : f32 to vector<2x128xf32>
    %19 = arith.select %17, %12, %18 : vector<2x128xi1>, vector<2x128xf32>
    %cst_14 = arith.constant dense<0xFF800000> : vector<2xf32>
    %20 = vector.multi_reduction <maximumf>, %19, %cst_14 [1] : vector<2x128xf32> to vector<2xf32>
    %21 = vector.shape_cast %20 : vector<2xf32> to vector<2x1xf32>
    %22 = vector.broadcast %21 : vector<2x1xf32> to vector<2x128xf32>
    %23 = arith.cmpf oeq, %19, %22 : vector<2x128xf32>
    %c2147483647_i32 = arith.constant 2147483647 : i32
    %24 = vector.broadcast %c2147483647_i32 : i32 to vector<2x128xi32>
    %25 = arith.select %23, %15, %24 : vector<2x128xi1>, vector<2x128xi32>
    %cst_15 = arith.constant dense<2147483647> : vector<2xi32>
    %26 = vector.multi_reduction <minsi>, %25, %cst_15 [1] : vector<2x128xi32> to vector<2xi32>
    %27 = vector.shape_cast %26 : vector<2xi32> to vector<2x1xi32>
    %c0_16 = arith.constant 0 : index
    %c0_17 = arith.constant 0 : index
    %28 = vector.load %arg7[%c0_16, %c0_17] : memref<2x1xi32, #tpu.memory_space<vmem>>, vector<2x1xi32>
    tpu.vector_store %arg7[%c0_16, %c0_17], %27 {strides = array<i32>} : memref<2x1xi32, #tpu.memory_space<vmem>>, vector<2x1xi32>,
    return
  }
  func.func @transform_0(%arg0: i32) -> (i32, i32) {
    %c0_i32 = arith.constant 0 : i32
    %c0_i32_0 = arith.constant 0 : i32
    return %arg0, %c0_i32 : i32, i32
  }
  func.func @transform_1(%arg0: i32) -> (i32, i32) {
    %c0_i32 = arith.constant 0 : i32
    %c0_i32_0 = arith.constant 0 : i32
    %c0_i32_1 = arith.constant 0 : i32
    return %c0_i32, %c0_i32_0 : i32, i32
  }
  func.func @transform_2(%arg0: i32) -> (i32, i32) {
    %c0_i32 = arith.constant 0 : i32
    %c0_i32_0 = arith.constant 0 : i32
    %c0_i32_1 = arith.constant 0 : i32
    return %c0_i32, %c0_i32_0 : i32, i32
  }
  func.func @transform_3(%arg0: i32) -> (i32, i32) {
    %c0_i32 = arith.constant 0 : i32
    %c0_i32_0 = arith.constant 0 : i32
    %c0_i32_1 = arith.constant 0 : i32
    return %c0_i32, %c0_i32_0 : i32, i32
  }
  func.func @transform_4(%arg0: i32) -> (i32, i32) {
    %c0_i32 = arith.constant 0 : i32
    %c0_i32_0 = arith.constant 0 : i32
    %c0_i32_1 = arith.constant 0 : i32
    return %c0_i32, %c0_i32_0 : i32, i32
  }
  func.func @transform_5(%arg0: i32) -> (i32, i32) {
    %c0_i32 = arith.constant 0 : i32
    %c0_i32_0 = arith.constant 0 : i32
    return %arg0, %c0_i32 : i32, i32
  }
  func.func @transform_6(%arg0: i32) -> (i32, i32) {
    %c0_i32 = arith.constant 0 : i32
    %c0_i32_0 = arith.constant 0 : i32
    return %arg0, %c0_i32 : i32, i32
  }
}

</mosaic_0001>

<bundles_post_ra>
// kernel: dqn_forward.1
= control target key start
LH: loop header
LB: loop body
LE: loop exit
PB: predicated region body
PF: predicated region fallthrough
CT: control target
= control target key end

     0   :  { %12 = vsyncpa [#allocation3], 0  ;;  %s576_s0 = inlined_call_operand.hbm [shape: f32[2,8], index: 0, kind: input, shape index: {}]   ;;  %s577_s1 = inlined_call_operand.hbm [shape: f32[8,128], index: 1, kind: input, shape index: {}]   ;;  %s578_s2 = inlined_call_operand.vmem [shape: f32[1,128], index: 2, kind: input, shape index: {}]   ;;  %s579_s3 = inlined_call_operand.hbm [shape: f32[128,128], index: 3, kind: input, shape index: {}]   ;;  %s580_s4 = inlined_call_operand.vmem [shape: f32[1,128], index: 4, kind: input, shape index: {}]   ;;  %s581_s5 = inlined_call_operand.hbm [shape: f32[2,2], index: 5, kind: output, shape index: {0}]   ;;  %s582_s6 = inlined_call_operand.vmem [shape: s32[2,1], index: 6, kind: output, shape index: {1}]  }
   0x1   :  { %13 = vsyncpa [#allocation6], 0 }
   0x2   :  { %14 = vsyncpa [#allocation4], 0  ;;  %s475_s21 = smov [#allocation5]   ;;  %s476_s23 = smov [#allocation2]  }
   0x3   :  { %s31_s22 = sshll.u32 %s475_s21, 4  ;;  %s21_s24 = sshll.u32 %s476_s23, 4  ;;  %s32_s22 = int_to_ptr.vmem [resolvable:$true] %s31_s22  ;;  %s22_s24 = int_to_ptr.vmem [resolvable:$true] %s21_s24 }
   0x4   :  { %s381_s27 = scalar_lea.hbm %s577_s1, 128 }
   0x5   :  { %p382_p0 = scmp.ne.s32.totalorder %s577_s1, %s381_s27  ;;  %p385_p1 = scmp.lt.u32.totalorder %s381_s27, %s577_s1 }
   0x7   :  { %p387_p2 = pnand %p385_p1, %p382_p0 }
   0x9   :  { %390 = shalt.err (!%p387_p2)
}
   0xa   :  { %s391_s8 = scalar_lea.vmem %s32_s22, 128  ;;  %p396_p4 = scmp.lt.s32.totalorder %s32_s22, %s32_s22 }
   0xb   :  { %p392_p3 = scmp.ne.s32.totalorder %s32_s22, %s391_s8  ;;  %p397_p5 = scmp.lt.s32.totalorder %s391_s8, %s391_s8 }
   0xd   :  { %p398_p6 = por %p397_p5, %p396_p4 }
   0xf   :  { %p399_p7 = pnand %p398_p6, %p392_p3 }
  0x11   :  { %402 = shalt.err (!%p399_p7)
}
  0x12   :  { %34 = dma.hbm_to_vmem [thread:$0]  %s577_s1, 128, %s32_s22, [#allocation6]  }
  0x13   :  { %s403_s13 = scalar_lea.hbm %s576_s0, 32 }
  0x14   :  { %p404_p8 = scmp.ne.s32.totalorder %s576_s0, %s403_s13  ;;  %p407_p9 = scmp.lt.u32.totalorder %s403_s13, %s576_s0 }
  0x16   :  { %p409_p10 = pnand %p407_p9, %p404_p8 }
  0x18   :  { %412 = shalt.err (!%p409_p10)
}
  0x19   :  { %s413_s18 = scalar_lea.vmem %s22_s24, 32  ;;  %p418_p12 = scmp.lt.s32.totalorder %s22_s24, %s22_s24 }
  0x1a   :  { %p414_p11 = scmp.ne.s32.totalorder %s22_s24, %s413_s18  ;;  %p419_p13 = scmp.lt.s32.totalorder %s413_s18, %s413_s18 }
  0x1c   :  { %p420_p0 = por %p419_p13, %p418_p12 }
  0x1e   :  { %p421_p1 = pnand %p420_p0, %p414_p11 }
  0x20   :  { %424 = shalt.err (!%p421_p1)
}
  0x21   :  { %24 = dma.hbm_to_vmem [thread:$0]  %s576_s0, 32, %s22_s24, [#allocation3]  }
  0x22   :  { %s477_s20 = smov [#allocation7]   ;;  %s425_s25 = scalar_lea.hbm %s579_s3, 2048 }
  0x23   :  { %s42_s21 = sshll.u32 %s477_s20, 4  ;;  %p426_p2 = scmp.ne.s32.totalorder %s579_s3, %s425_s25  ;;  %s43_s21 = int_to_ptr.vmem [resolvable:$true] %s42_s21 }
  0x24   :  { %p429_p3 = scmp.lt.u32.totalorder %s425_s25, %s579_s3 }
  0x26   :  { %p431_p4 = pnand %p429_p3, %p426_p2 }
  0x28   :  { %434 = shalt.err (!%p431_p4)
}
  0x29   :  { %s435_s30 = scalar_lea.vmem %s43_s21, 2048  ;;  %p440_p6 = scmp.lt.s32.totalorder %s43_s21, %s43_s21 }
  0x2a   :  { %p436_p5 = scmp.ne.s32.totalorder %s43_s21, %s435_s30  ;;  %p441_p7 = scmp.lt.s32.totalorder %s435_s30, %s435_s30 }
  0x2c   :  { %p442_p8 = por %p441_p7, %p440_p6 }
  0x2e   :  { %p443_p9 = pnand %p442_p8, %p436_p5 }
  0x30   :  { %446 = shalt.err (!%p443_p9)
}
  0x31   :  { %s478_s0 = smov 128   ;;  %s479_s24 = smov 8  }
  0x32   :  { %48 = dma.hbm_to_vmem [thread:$0]  %s579_s3, 2048, %s43_s21, [#allocation6], %s478_s0, %s478_s0, %s479_s24  }
  0x33   :  { %469 = dma.done.wait [#allocation3], 32  }
  0x34   :  { %470 = vsyncadd [#allocation3], 4294967264 }
  0x35   :  { %471 = dma.done.wait [#allocation6], 2176  }
  0x36   :  { %472 = vsyncadd [#allocation6], 4294965120  ;;  %v480_v0 = vmov 0.0   ;;  %vm481_vm0 = vmmov 0   ;;  %v482_v1 = vmov 0.0|0.0   ;;  %vm69_vm1 = vcmask 64512  }
  0x37   :  { %308 = vmatprep.subr.mxu0 %v480_v0  ;;  %310 = vmatprep.mubr.msk.f32.mxu0 %vm481_vm0, %v480_v0  ;;  %v61_v2 = vld [vmem:[#allocation5] sm:$0xff]  ;;  %v60_v3 = vld [vmem:[#allocation2] sm:$0x3]  ;;  %v144_v4 = vld [vmem:[#allocation7] sm:$0xff]  ;;  %v239_v33 = vlaneseq  ;;  %vm237_vm3 = vcmask 9216   ;;  %vm243_vm4 = vcmask 1041408  }
  0x38   :  { %348 = vmatprep.subr.bf16.mxu1 %v482_v1  ;;  %345 = vmatprep.mubr.msk.f32.mxu1 %vm481_vm0, %v480_v0  ;;  %v145_v5 = vld [vmem:[#allocation7 + $0x8] sm:$0xff]  ;;  %v146_v6 = vld [vmem:[#allocation7 + $0x10] sm:$0xff]  ;;  %v147_v7 = vld [vmem:[#allocation7 + $0x18] sm:$0xff] }
  0x39   :  { %309 = vmatpush3.msra.mxu0 %v61_v2  ;;  %v349_v8 = vpack.c.bf16 %v145_v5, %v144_v4  ;;  %v352_v9 = vpack.c.bf16 %v147_v7, %v146_v6  ;;  %v148_v10 = vld [vmem:[#allocation7 + $0x20] sm:$0xff]  ;;  %v149_v11 = vld [vmem:[#allocation7 + $0x28] sm:$0xff]  ;;  %v150_v13 = vld [vmem:[#allocation7 + $0x30] sm:$0xff]  ;;  %v240_v34 = vand.u32 127, %v239_v33 }
  0x3a   :  { %311 = vmatmul.mubr.msk.f32.vlgmr.msra.gmra.mrb[0].mxu0 %vm69_vm1, %v60_v3  ;;  %v355_v12 = vpack.c.bf16 %v149_v11, %v148_v10  ;;  %v151_v14 = vld [vmem:[#allocation7 + $0x38] sm:$0xff]  ;;  %v152_v16 = vld [vmem:[#allocation7 + $0x40] sm:$0xff]  ;;  %v153_v17 = vld [vmem:[#allocation7 + $0x48] sm:$0xff] }
  0x3b   :  { %350 = vmatpush3.bf16.msra.mxu1 %v349_v8  ;;  %v358_v15 = vpack.c.bf16 %v151_v14, %v150_v13  ;;  %v361_v18 = vpack.c.bf16 %v153_v17, %v152_v16  ;;  %v154_v19 = vld [vmem:[#allocation7 + $0x50] sm:$0xff]  ;;  %v155_v20 = vld [vmem:[#allocation7 + $0x58] sm:$0xff]  ;;  %v156_v22 = vld [vmem:[#allocation7 + $0x60] sm:$0xff]  ;;  %vm241_vm2 = vcmp.lt.s32.totalorder %v240_v34, 2 }
  0x3c   :  { %351 = vmatprep.subr.bf16.mxu1 %v482_v1  ;;  %v364_v21 = vpack.c.bf16 %v155_v20, %v154_v19  ;;  %v157_v23 = vld [vmem:[#allocation7 + $0x68] sm:$0xff]  ;;  %v158_v25 = vld [vmem:[#allocation7 + $0x70] sm:$0xff]  ;;  %v159_v26 = vld [vmem:[#allocation7 + $0x78] sm:$0xff] }
  0x3d   :  { %v367_v24 = vpack.c.bf16 %v157_v23, %v156_v22  ;;  %v370_v27 = vpack.c.bf16 %v159_v26, %v158_v25  ;;  %v286_v28 = vld [vmem:[%s578_s2] ss:$0 sm:$0xff]  ;;  %s483_s2 = smov [#allocation8]  }
  0x3e   :  { %v288_v35 = vld [vmem:[%s580_s4] ss:$0 sm:$0xff]  ;;  %s272_s4 = sshll.u32 %s483_s2, 4  ;;  %s273_s4 = int_to_ptr.vmem [resolvable:$true] %s272_s4 }
  0x3f   :  { %353 = vmatpush3.bf16.msra.mxu1 %v352_v9  ;;  %s447_s12 = scalar_lea.vmem %s273_s4, 32  ;;  %p452_p11 = scmp.lt.s32.totalorder %s273_s4, %s273_s4 }
  0x40   :  { %354 = vmatprep.subr.bf16.mxu1 %v482_v1  ;;  %p448_p10 = scmp.ne.s32.totalorder %s273_s4, %s447_s12  ;;  %p453_p12 = scmp.lt.s32.totalorder %s447_s12, %s447_s12 }
  0x42   :  { %p454_p13 = por %p453_p12, %p452_p11 }
  0x43   :  { %356 = vmatpush3.bf16.msra.mxu1 %v355_v12 }
  0x44   :  { %357 = vmatprep.subr.bf16.mxu1 %v482_v1  ;;  %p455_p0 = pnand %p454_p13, %p448_p10 }
  0x47   :  { %359 = vmatpush3.bf16.msra.mxu1 %v358_v15 }
  0x48   :  { %360 = vmatprep.subr.bf16.mxu1 %v482_v1 }
  0x4b   :  { %362 = vmatpush3.bf16.msra.mxu1 %v361_v18 }
  0x4c   :  { %363 = vmatprep.subr.bf16.mxu1 %v482_v1 }
  0x4f   :  { %365 = vmatpush3.bf16.msra.mxu1 %v364_v21 }
  0x50   :  { %366 = vmatprep.subr.bf16.mxu1 %v482_v1 }
  0x53   :  { %368 = vmatpush3.bf16.msra.mxu1 %v367_v24 }
  0x54   :  { %369 = vmatprep.subr.bf16.mxu1 %v482_v1 }
  0x57   :  { %371 = vmatpush3.bf16.msra.mxu1 %v370_v27 }
 0x10d   :  { %v139_v29 = vpop.f32.mrb[0].mxu0 }
 0x10e   :  { %v140_v30 = vadd.f32 %v286_v28, %v139_v29  ;;  %v312_v31 = vpop.f32.mrb[1].mxu0 }
 0x110   :  { %v143_v32 = vmax.f32 %v140_v30, 0.0 }
 0x112   :  { %346 = vmatmul.mubr.f32.vlgmr.msra.gmra.mrb[0].mxu1 %v143_v32 }
 0x1e5   :  { %v233_v36 = vpop.f32.mrb[0].mxu1 }
 0x1e6   :  { %v234_v37 = vadd.f32 %v288_v35, %v233_v36  ;;  %v347_v38 = vpop.f32.mrb[1].mxu1 }
 0x1e8   :  { %v242_v39 = vsel %vm241_vm2, %v234_v37, -inf  ;;  %238 = vst.msk [vmem:[#allocation8] sm:$0x3] %vm237_vm3, %v234_v37 }
 0x1e9   :  { %v244_v40 = vsel %vm243_vm4, %v242_v39, -inf }
 0x1ea   :  { %245 = vmax.xlane.f32.xlu0 %v244_v40 }
 0x277   :  { %v246_v41 = vpop.xlane.xlu0 %245 }
 0x278   :  { %vm247_vm5 = vcmp.eq.f32.partialorder %v242_v39, %v246_v41 }
 0x279   :  { %v248_v42 = vsel %vm247_vm5, %v240_v34, 2147483647 }
 0x27a   :  { %v249_v43 = vsel %vm243_vm4, %v248_v42, 2147483647 }
 0x27b   :  { %v251_v44 = vshra.s32 %v249_v43, 16  ;;  %v250_v46 = vand.u32 65535, %v249_v43 }
 0x27d   :  { %v253_v45 = vcvt.s32.f32 %v251_v44  ;;  %v252_v48 = vcvt.s32.f32 %v250_v46 }
 0x27f   :  { %254 = vmin.xlane.f32.xlu0 %v253_v45 }
 0x30c   :  { %v255_v47 = vpop.xlane.xlu0 %254 }
 0x30d   :  { %vm256_vm6 = vcmp.eq.f32.partialorder %v253_v45, %v255_v47 }
 0x30e   :  { %v257_v49 = vsel %vm256_vm6, %v252_v48, inf }
 0x30f   :  { %258 = vmin.xlane.f32.xlu1 %v257_v49 }
 0x310   :  { %458 = shalt.err (!%p455_p0)
}
 0x311   :  { %s459_s15 = scalar_lea.hbm %s581_s5, 32 }
 0x312   :  { %p460_p1 = scmp.ne.s32.totalorder %s581_s5, %s459_s15  ;;  %p463_p2 = scmp.lt.u32.totalorder %s459_s15, %s581_s5 }
 0x314   :  { %p465_p3 = pnand %p463_p2, %p460_p1 }
 0x316   :  { %468 = shalt.err (!%p465_p3)
}
 0x317   :  { %275 = dma.vmem_to_hbm [thread:$0]  %s273_s4, 32, %s581_s5, [#allocation4]   ;;  %v261_v50 = vcvt.f32.s32 %v255_v47  ;;  %vm264_vm7 = vcmask 1024  }
 0x319   :  { %v262_v52 = vshll.u32 %v261_v50, 16 }
 0x39c   :  { %v259_v51 = vpop.xlane.xlu1 %258 }
 0x39d   :  { %v260_v53 = vcvt.f32.s32 %v259_v51 }
 0x39f   :  { %v263_v54 = vadd.s32 %v262_v52, %v260_v53 }
 0x3a1   :  { %265 = vst.msk [vmem:[%s582_s6] sm:$0x3] %vm264_vm7, %v263_v54 }
 0x3a2   :  { %473 = dma.done.wait [#allocation4], 32  }
 0x3a3   :  { %474 = vsyncadd [#allocation4], 4294967264 }
 0x3a4   :  { %283 = vsyncpa [#allocation3], 1 }
 0x3a5   :  { %284 = vsyncpa [#allocation6], 1 }
 0x3a6   :  { %285 = vsyncpa [#allocation4], 1 }

</bundles_post_ra>
